<compile_context>
chip_gen: v7x
topology: tpu7x:2x2x1
jax: 0.10.0
libtpu: 0.0.40
codegen_flags: <defaults>
</compile_context>

<pallas_src>
import jax
import jax.numpy as jnp
from jax.experimental import pallas as pl
from jax.experimental.pallas import tpu as pltpu

_LANE = 128
_MAX_TILE_ROWS = 1024  # 1024 rows * 128 lanes = 131072 elements / feature / step


def _round_up(x: int, m: int) -> int:
    return ((x + m - 1) // m) * m


def _vehicle_state_kernel(x_ref, o_ref):
    # x_ref: (4, T, 128) VMEM tile, feature-major (rows = px, py, heading, vel)
    # o_ref: (5, T, 128) VMEM tile (rows = px, py, sin(h), cos(h), vel)
    # Each x_ref[k] / o_ref[k] is a dense (T, 128) slab: full-vreg EUP sin/cos
    # and unmasked vst stores; no lane slicing, no cross-lane shuffles.
    o_ref[0:2] = x_ref[0:2]          # px, py pass-through (single 2-row copy)
    h = x_ref[2]
    o_ref[2] = jnp.sin(h)
    o_ref[3] = jnp.cos(h)
    o_ref[4] = x_ref[3]              # velocity pass-through


def vehicle_state_transformation(x, *, min_pallas_n: int = 4096):
    """Pallas equivalent of VehicleStateTransformation.forward.

    x: (N, 4) or (4,) array with columns [px, py, heading, velocity].
    Returns (N, 5) array [px, py, sin(heading), cos(heading), velocity].
    """
    x = jnp.atleast_2d(x)            # torch.atleast_2d semantics
    n = x.shape[0]
    dtype = x.dtype

    # Tiny batches (the module's nominal workload is a handful of vehicles):
    # a standalone pallas_call is pure launch + layout-plumbing overhead.
    if n < min_pallas_n:
        h = x[:, 2]
        return jnp.stack([x[:, 0], x[:, 1], jnp.sin(h), jnp.cos(h), x[:, 3]], axis=1)

    # ---- tile selection (lane-rows of 128 elements each) -------------------
    rows = pl.cdiv(n, _LANE)
    steps = max(1, pl.cdiv(rows, _MAX_TILE_ROWS))
    if rows >= 16 and steps < 2:
        steps = 2                    # give v7x's second TensorCore grid steps
    tile_rows = _round_up(pl.cdiv(rows, steps), 8)   # (8,128) block constraint
    steps = pl.cdiv(rows, tile_rows)
    rows_pad = steps * tile_rows
    n_pad = rows_pad * _LANE

    # ---- layout plumbing: pad first, then one fused transpose+reshape ------
    xp = jnp.pad(x, ((0, n_pad - n), (0, 0))) if n_pad != n else x
    x_fm = xp.T.reshape(4, rows_pad, _LANE)          # feature-major, lane-dense

    elem_bytes = jnp.dtype(dtype).itemsize
    out_fm = pl.pallas_call(
        _vehicle_state_kernel,
        out_shape=jax.ShapeDtypeStruct((5, rows_pad, _LANE), dtype),
        grid=(steps,),
        in_specs=[pl.BlockSpec((4, tile_rows, _LANE), lambda i: (0, i, 0))],
        out_specs=pl.BlockSpec((5, tile_rows, _LANE), lambda i: (0, i, 0)),
        compiler_params=pltpu.CompilerParams(
            dimension_semantics=("parallel",),       # megacore split on v7x
        ),
        cost_estimate=pl.CostEstimate(
            flops=0,
            transcendentals=2 * n_pad,
            bytes_accessed=(4 + 5) * n_pad * elem_bytes,
        ),
    )(x_fm)

    # Back to the module's (N, 5) layout, dropping batch padding.
    return out_fm.reshape(5, n_pad)[:, :n].T


def _reference(x):
    x = jnp.atleast_2d(x)
    return jnp.stack(
        [x[:, 0], x[:, 1], jnp.sin(x[:, 2]), jnp.cos(x[:, 2]), x[:, 3]], axis=1
    )


if __name__ == "__main__":
    key = jax.random.PRNGKey(0)

    # Small batch consistent with the module: 8 vehicle states x 4 features.
    # Force the Pallas path (min_pallas_n=0) so the kernel itself is exercised.
    x = jax.random.normal(key, (8, 4), dtype=jnp.float32)
    out = jax.block_until_ready(vehicle_state_transformation(x, min_pallas_n=0))
    ref = _reference(x)
    assert out.shape == (8, 5), out.shape
    assert jnp.allclose(out, ref, atol=1e-6, rtol=1e-6), "mismatch vs reference (small)"

    # 1-D (atleast_2d) path — takes the tiny-N jnp early-out.
    out1d = jax.block_until_ready(vehicle_state_transformation(x[0]))
    assert out1d.shape == (1, 5), out1d.shape
    assert jnp.allclose(out1d, _reference(x[0]), atol=1e-6, rtol=1e-6), "mismatch (1-D)"

    # Larger, non-tile-multiple batch exercising the multi-step grid
    # (2 grid steps here -> both v7x TensorCores get work).
    x_big = jax.random.normal(jax.random.PRNGKey(1), (20000, 4), dtype=jnp.float32)
    out_big = jax.block_until_ready(vehicle_state_transformation(x_big))
    assert out_big.shape == (20000, 5), out_big.shape
    assert jnp.allclose(out_big, _reference(x_big), atol=1e-5, rtol=1e-5), "mismatch (big)"

    print("KERNEL_OK")
</pallas_src>

<mosaic_0001>
module attributes {stable_mosaic.version = 11 : i64} {
  func.func @_vehicle_state_kernel(%arg0: i32, %arg1: memref<4x8x128xf32, #tpu.memory_space<vmem>>, %arg2: memref<5x8x128xf32, #tpu.memory_space<vmem>>) attributes {dimension_semantics = [#tpu.dimension_semantics<parallel>], iteration_bounds = array<i64: 1>, scalar_prefetch = 0 : i64, scratch_operands = 0 : i64, tpu.core_type = #tpu.core_type<tc>, window_params = [{transform_indices = @transform_0, window_bounds = array<i64: 4, 8, 128>}, {transform_indices = @transform_1, window_bounds = array<i64: 5, 8, 128>}]} {
    %c0 = arith.constant 0 : index
    %c0_0 = arith.constant 0 : index
    %c0_1 = arith.constant 0 : index
    %0 = vector.load %arg1[%c0, %c0_0, %c0_1] : memref<4x8x128xf32, #tpu.memory_space<vmem>>, vector<2x8x128xf32>
    %c0_2 = arith.constant 0 : index
    %c0_3 = arith.constant 0 : index
    %c0_4 = arith.constant 0 : index
    %1 = vector.load %arg2[%c0_2, %c0_3, %c0_4] : memref<5x8x128xf32, #tpu.memory_space<vmem>>, vector<2x8x128xf32>
    tpu.vector_store %arg2[%c0_2, %c0_3, %c0_4], %0 {strides = array<i32>} : memref<5x8x128xf32, #tpu.memory_space<vmem>>, vector<2x8x128xf32>,
    %c2 = arith.constant 2 : index
    %c0_5 = arith.constant 0 : index
    %c0_6 = arith.constant 0 : index
    %2 = vector.load %arg1[%c2, %c0_5, %c0_6] : memref<4x8x128xf32, #tpu.memory_space<vmem>>, vector<1x8x128xf32>
    %3 = vector.shape_cast %2 : vector<1x8x128xf32> to vector<8x128xf32>
    %4 = math.sin %3 : vector<8x128xf32>
    %c2_7 = arith.constant 2 : index
    %c0_8 = arith.constant 0 : index
    %c0_9 = arith.constant 0 : index
    %5 = vector.load %arg2[%c2_7, %c0_8, %c0_9] : memref<5x8x128xf32, #tpu.memory_space<vmem>>, vector<1x8x128xf32>
    %6 = vector.shape_cast %5 : vector<1x8x128xf32> to vector<8x128xf32>
    %7 = vector.shape_cast %4 : vector<8x128xf32> to vector<1x8x128xf32>
    tpu.vector_store %arg2[%c2_7, %c0_8, %c0_9], %7 {strides = array<i32>} : memref<5x8x128xf32, #tpu.memory_space<vmem>>, vector<1x8x128xf32>,
    %8 = math.cos %3 : vector<8x128xf32>
    %c3 = arith.constant 3 : index
    %c0_10 = arith.constant 0 : index
    %c0_11 = arith.constant 0 : index
    %9 = vector.load %arg2[%c3, %c0_10, %c0_11] : memref<5x8x128xf32, #tpu.memory_space<vmem>>, vector<1x8x128xf32>
    %10 = vector.shape_cast %9 : vector<1x8x128xf32> to vector<8x128xf32>
    %11 = vector.shape_cast %8 : vector<8x128xf32> to vector<1x8x128xf32>
    tpu.vector_store %arg2[%c3, %c0_10, %c0_11], %11 {strides = array<i32>} : memref<5x8x128xf32, #tpu.memory_space<vmem>>, vector<1x8x128xf32>,
    %c3_12 = arith.constant 3 : index
    %c0_13 = arith.constant 0 : index
    %c0_14 = arith.constant 0 : index
    %12 = vector.load %arg1[%c3_12, %c0_13, %c0_14] : memref<4x8x128xf32, #tpu.memory_space<vmem>>, vector<1x8x128xf32>
    %13 = vector.shape_cast %12 : vector<1x8x128xf32> to vector<8x128xf32>
    %c4 = arith.constant 4 : index
    %c0_15 = arith.constant 0 : index
    %c0_16 = arith.constant 0 : index
    %14 = vector.load %arg2[%c4, %c0_15, %c0_16] : memref<5x8x128xf32, #tpu.memory_space<vmem>>, vector<1x8x128xf32>
    %15 = vector.shape_cast %14 : vector<1x8x128xf32> to vector<8x128xf32>
    %16 = vector.shape_cast %13 : vector<8x128xf32> to vector<1x8x128xf32>
    tpu.vector_store %arg2[%c4, %c0_15, %c0_16], %16 {strides = array<i32>} : memref<5x8x128xf32, #tpu.memory_space<vmem>>, vector<1x8x128xf32>,
    return
  }
  func.func @transform_0(%arg0: i32) -> (i32, i32, i32) {
    %c0_i32 = arith.constant 0 : i32
    %c0_i32_0 = arith.constant 0 : i32
    %c0_i32_1 = arith.constant 0 : i32
    return %c0_i32, %arg0, %c0_i32_0 : i32, i32, i32
  }
  func.func @transform_1(%arg0: i32) -> (i32, i32, i32) {
    %c0_i32 = arith.constant 0 : i32
    %c0_i32_0 = arith.constant 0 : i32
    %c0_i32_1 = arith.constant 0 : i32
    return %c0_i32, %arg0, %c0_i32_0 : i32, i32, i32
  }
}

</mosaic_0001>

<bundles_post_ra>
// kernel: tpu_custom_call.1
= control target key start
LH: loop header
LB: loop body
LE: loop exit
PB: predicated region body
PF: predicated region fallthrough
CT: control target
= control target key end

     0   :  { %6 = vsyncpa [#allocation3], 0  ;;  %s406_s0 = inlined_call_operand.hbm [shape: f32[4,8,128], index: 0, kind: input, shape index: {}]   ;;  %s407_s1 = inlined_call_operand.hbm [shape: f32[5,8,128], index: 1, kind: output, shape index: {}]  }
   0x1   :  { %7 = vsyncpa [#allocation4], 0  ;;  %s335_s6 = smov [#allocation2]   ;;  %s287_s10 = scalar_lea.hbm %s406_s0, 512 }
   0x2   :  { %s13_s7 = sshll.u32 %s335_s6, 4  ;;  %p288_p0 = scmp.ne.s32.totalorder %s406_s0, %s287_s10  ;;  %s14_s7 = int_to_ptr.vmem [resolvable:$true] %s13_s7 }
   0x3   :  { %p291_p1 = scmp.lt.u32.totalorder %s287_s10, %s406_s0 }
   0x5   :  { %p293_p2 = pnand %p291_p1, %p288_p0 }
   0x7   :  { %296 = shalt.err (!%p293_p2)
}
   0x8   :  { %s297_s15 = scalar_lea.vmem %s14_s7, 512  ;;  %p302_p4 = scmp.lt.s32.totalorder %s14_s7, %s14_s7 }
   0x9   :  { %p298_p3 = scmp.ne.s32.totalorder %s14_s7, %s297_s15  ;;  %p303_p5 = scmp.lt.s32.totalorder %s297_s15, %s297_s15 }
   0xb   :  { %p304_p6 = por %p303_p5, %p302_p4 }
   0xd   :  { %p305_p7 = pnand %p304_p6, %p298_p3 }
   0xf   :  { %308 = shalt.err (!%p305_p7)
}
  0x10   :  { %s336_s16 = smov 128   ;;  %s337_s17 = smov 8  }
  0x11   :  { %19 = dma.hbm_to_vmem [thread:$0]  %s406_s0, 512, %s14_s7, [#allocation3], %s336_s16, %s336_s16, %s337_s17  }
  0x12   :  { %331 = dma.done.wait [#allocation3], 512  }
  0x13   :  { %332 = vsyncadd [#allocation3], 4294966784  ;;  %v23_v0 = vld [vmem:[#allocation2] sm:$0xff]  ;;  %v24_v1 = vld [vmem:[#allocation2 + $0x8] sm:$0xff]  ;;  %v338_v15 = vmov 683565275  }
  0x14   :  { %v370_v2 = vld [vmem:[#allocation2 + $0x10] sm:$0xff]  ;;  %25 = vst [vmem:[#allocation5] sm:$0xff] %v23_v0  ;;  %26 = vst [vmem:[#allocation5 + $0x8] sm:$0xff] %v24_v1  ;;  %v241_v4 = vld [vmem:[#allocation2 + $0x18] sm:$0xff]  ;;  %v339_v17 = vmov 2475754826  }
  0x15   :  { %v32_v3 = vand.u32 2139095040, %v370_v2  ;;  %243 = vst [vmem:[#allocation5 + $0x20] sm:$0xff] %v241_v4  ;;  %v29_v6 = vand.u32 2147483647, %v370_v2  ;;  %v340_v19 = vmov 2131351028   ;;  %vm121_vm15 = vweird.f32 %v370_v2 }
  0x16   :  { %v341_v21 = vmov 2102212464   ;;  %v342_v23 = vmov 920167782   ;;  %v343_v30 = vmov 1326507024  }
  0x17   :  { %v33_v5 = vshrl.u32 %v32_v3, 23  ;;  %v36_v9 = vand.u32 8388607, %v29_v6  ;;  %vm31_vm7 = vcmp.lt.s32.totalorder %v370_v2, 0  ;;  %vm30_vm8 = vcmp.le.f32.partialorder %v29_v6, 0.7853982 }
  0x18   :  { %s344_s0 = smov [#allocation5]  }
  0x19   :  { %v261_v7 = vadd.s32 4294967169, %v33_v5  ;;  %v37_v12 = vor.u32 8388608, %v36_v9  ;;  %s249_s20 = sshll.u32 %s344_s0, 4  ;;  %s250_s20 = int_to_ptr.vmem [resolvable:$true] %s249_s20 }
  0x1a   :  { %s309_s21 = scalar_lea.vmem %s250_s20, 640  ;;  %p314_p9 = scmp.lt.s32.totalorder %s250_s20, %s250_s20 }
  0x1b   :  { %v39_v8 = vadd.s32 1, %v261_v7  ;;  %v77_v32 = vshll.u32 %v37_v12, 8  ;;  %p310_p8 = scmp.ne.s32.totalorder %s250_s20, %s309_s21  ;;  %p315_p10 = scmp.lt.s32.totalorder %s309_s21, %s309_s21 }
  0x1d   :  { %vm40_vm0 = vcmp.gt.s32.totalorder %v39_v8, 0  ;;  %p316_p11 = por %p315_p10, %p314_p9 }
  0x1e   :  { %v41_v10 = vsel %vm40_vm0, %v39_v8, 0 }
  0x1f   :  { %v43_v11 = vand.u32 31, %v41_v10  ;;  %v42_v13 = vshrl.u32 %v41_v10, 5  ;;  %p317_p12 = pnand %p316_p11, %p310_p8 }
  0x21   :  { %v44_v14 = vsub.s32 32, %v43_v11  ;;  %v46_v16 = vshll.u32 %v338_v15, %v43_v11  ;;  %v49_v18 = vshll.u32 %v339_v17, %v43_v11  ;;  %v52_v20 = vshll.u32 %v340_v19, %v43_v11 }
  0x22   :  { %v55_v22 = vshll.u32 %v341_v21, %v43_v11  ;;  %v58_v24 = vshll.u32 %v342_v23, %v43_v11  ;;  %vm61_vm1 = vcmp.lt.s32.totalorder %v42_v13, 1  ;;  %vm64_vm2 = vcmp.lt.s32.totalorder %v42_v13, 4 }
  0x23   :  { %v45_v25 = vshrl.u32 %v338_v15, %v44_v14  ;;  %v47_v26 = vshrl.u32 %v339_v17, %v44_v14  ;;  %v50_v27 = vshrl.u32 %v340_v19, %v44_v14  ;;  %v53_v28 = vshrl.u32 %v341_v21, %v44_v14 }
  0x24   :  { %v56_v29 = vshrl.u32 %v342_v23, %v44_v14  ;;  %v59_v31 = vshrl.u32 %v343_v30, %v44_v14  ;;  %vm62_vm3 = vcmp.lt.s32.totalorder %v42_v13, 2  ;;  %vm63_vm4 = vcmp.lt.s32.totalorder %v42_v13, 3 }
  0x25   :  { %v48_v33 = vor.u32 %v47_v26, %v46_v16  ;;  %v51_v34 = vor.u32 %v50_v27, %v49_v18  ;;  %v54_v35 = vor.u32 %v53_v28, %v52_v20 }
  0x26   :  { %v57_v36 = vor.u32 %v56_v29, %v55_v22  ;;  %v60_v37 = vor.u32 %v59_v31, %v58_v24 }
  0x27   :  { %v65_v38 = vsel %vm61_vm1, %v45_v25, %v48_v33  ;;  %v66_v39 = vsel %vm64_vm2, %v54_v35, 2102212464  ;;  %v69_v40 = vsel %vm61_vm1, %v48_v33, %v51_v34  ;;  %v73_v41 = vsel %vm61_vm1, %v51_v34, %v54_v35 }
  0x28   :  { %v67_v42 = vsel %vm63_vm4, %v51_v34, %v66_v39  ;;  %v70_v43 = vsel %vm64_vm2, %v57_v36, 920167782  ;;  %v74_v44 = vsel %vm64_vm2, %v60_v37, 1326507024 }
  0x29   :  { %v71_v45 = vsel %vm63_vm4, %v54_v35, %v70_v43  ;;  %v75_v46 = vsel %vm63_vm4, %v57_v36, %v74_v44  ;;  %v68_v47 = vsel %vm62_vm3, %v65_v38, %v67_v42 }
  0x2a   :  { %v72_v48 = vsel %vm62_vm3, %v69_v40, %v71_v45  ;;  %v76_v49 = vsel %vm62_vm3, %v73_v41, %v75_v46  ;;  %v84_v54 = vmul.u32 %v77_v32, %v68_v47 }
  0x2b   :  { %v376_v50 = vmul.u32.u64.low %v77_v32, %v76_v49  ;;  %v377_v51 = vmul.u32.u64.high %v77_v32, %v76_v49, %v376_v50  ;;  %v379_v52 = vmul.u32.u64.low %v77_v32, %v72_v48  ;;  %v380_v53 = vmul.u32.u64.high %v77_v32, %v72_v48, %v379_v52 }
  0x2d   :  { %vm86_vm5 = vc.u32 %v377_v51, %v379_v52  ;;  %v87_v55 = vadd.s32 1, %v380_v53  ;;  %v85_v3 = vadd.s32 %v379_v52, %v377_v51 }
  0x2f   :  { %v88_v56 = vsel %vm86_vm5, %v87_v55, %v380_v53 }
  0x30   :  { %v89_v57 = vadd.s32 %v88_v56, %v84_v54 }
  0x32   :  { %v90_v58 = vadd.s32 536870912, %v89_v57 }
  0x34   :  { %v91_v59 = vshrl.u32 %v90_v58, 30 }
  0x36   :  { %v92_v60 = vshll.u32 %v91_v59, 30  ;;  %v115_v16 = vsub.s32 4, %v91_v59 }
  0x38   :  { %v93_v61 = vsub.s32 %v89_v57, %v92_v60  ;;  %v116_v19 = vsel %vm31_vm7, %v115_v16, %v91_v59 }
  0x39   :  { %v118_v22 = vsel %vm30_vm8, 0, %v116_v19 }
  0x3a   :  { %v95_v62 = vsub.s32 0, %v93_v61  ;;  %v122_v23 = vadd.s32 3, %v118_v22  ;;  %v228_v25 = vand.u32 3, %v118_v22 }
  0x3c   :  { %v262_v63 = vmin.u32 %v95_v62, %v93_v61  ;;  %v123_v24 = vand.u32 3, %v122_v23  ;;  %vm233_vm10 = vcmp.eq.s32.totalorder %v228_v25, 2  ;;  %vm230_vm12 = vcmp.eq.s32.totalorder %v228_v25, 0 }
  0x3d   :  { %vm229_vm14 = vcmp.lt.s32.totalorder %v228_v25, 2 }
  0x3e   :  { %v97_v0 = vclz %v262_v63  ;;  %vm128_vm9 = vcmp.eq.s32.totalorder %v123_v24, 2  ;;  %vm125_vm11 = vcmp.eq.s32.totalorder %v123_v24, 0  ;;  %vm124_vm13 = vcmp.lt.s32.totalorder %v123_v24, 2 }
  0x40   :  { %v263_v1 = vadd.s32 4294967294, %v97_v0 }
  0x42   :  { %vm264_vm6 = vcmp.lt.s32.totalorder %v263_v1, 0 }
  0x43   :  { %v100_v4 = vsel %vm264_vm6, 0, %v263_v1 }
  0x44   :  { %v101_v5 = vsub.s32 32, %v100_v4  ;;  %v102_v7 = vshll.u32 %v93_v61, %v100_v4  ;;  %v105_v8 = vsub.s32 4294967266, %v100_v4 }
  0x46   :  { %v103_v9 = vshrl.u32 %v85_v3, %v101_v5  ;;  %v106_v10 = vadd.s32 127, %v105_v8 }
  0x48   :  { %v104_v11 = vor.u32 %v103_v9, %v102_v7  ;;  %v107_v12 = vshll.u32 %v106_v10, 23 }
  0x4a   :  { %v108_v13 = vor.u32 4788187, %v107_v12  ;;  %v111_v14 = vcvt.s32.f32 %v104_v11 }
  0x4c   :  { %v109_v15 = vand.u32 2147483647, %v108_v13 }
  0x4e   :  { %v112_v17 = vmul.f32 %v111_v14, %v109_v15 }
  0x50   :  { %v113_v18 = vxor.u32 2147483648, %v112_v17 }
  0x52   :  { %v114_v20 = vsel %vm31_vm7, %v113_v18, %v112_v17 }
  0x53   :  { %v117_v21 = vsel %vm30_vm8, %v370_v2, %v114_v20 }
  0x54   :  { %283 = vcosq.f32 %v117_v21 }
  0x55   :  { %285 = vsinq.f32 %v117_v21 }
  0x5e   :  { %v284_v26 = vpop.eup %283 }
  0x5f   :  { %v286_v27 = vpop.eup %285  ;;  %v129_v28 = vxor.u32 2147483648, %v284_v26 }
  0x60   :  { %v126_v6 = vxor.u32 2147483648, %v286_v27 }
  0x61   :  { %v130_v29 = vsel %vm128_vm9, %v129_v28, %v286_v27  ;;  %v235_v30 = vsel %vm233_vm10, %v129_v28, %v286_v27 }
  0x62   :  { %v127_v31 = vsel %vm125_vm11, %v284_v26, %v126_v6  ;;  %v232_v32 = vsel %vm230_vm12, %v284_v26, %v126_v6 }
  0x63   :  { %v131_v33 = vsel %vm124_vm13, %v127_v31, %v130_v29  ;;  %v236_v34 = vsel %vm229_vm14, %v232_v32, %v235_v30 }
  0x64   :  { %v132_v35 = vsel %vm121_vm15, nan, %v131_v33  ;;  %v237_v36 = vsel %vm121_vm15, nan, %v236_v34 }
  0x65   :  { %134 = vst [vmem:[#allocation5 + $0x10] sm:$0xff] %v132_v35  ;;  %239 = vst [vmem:[#allocation5 + $0x18] sm:$0xff] %v237_v36 }
  0x66   :  { %320 = shalt.err (!%p317_p12)
}
  0x67   :  { %s321_s24 = scalar_lea.hbm %s407_s1, 640 }
  0x68   :  { %p322_p13 = scmp.ne.s32.totalorder %s407_s1, %s321_s24  ;;  %p325_p0 = scmp.lt.u32.totalorder %s321_s24, %s407_s1 }
  0x6a   :  { %p327_p1 = pnand %p325_p0, %p322_p13 }
  0x6c   :  { %330 = shalt.err (!%p327_p1)
}
  0x6d   :  { %255 = dma.vmem_to_hbm [thread:$0]  %s250_s20, 640, %s407_s1, [#allocation4], %s336_s16, %s336_s16, %s337_s17  }
  0x6e   :  { %333 = dma.done.wait [#allocation4], 640  }
  0x6f   :  { %334 = vsyncadd [#allocation4], 4294966656 }
  0x70   :  { %259 = vsyncpa [#allocation3], 1 }
  0x71   :  { %260 = vsyncpa [#allocation4], 1 }

</bundles_post_ra>
